<compile_context>
chip_gen: v7x
topology: tpu7x:2x2x1
jax: 0.10.0
libtpu: 0.0.40
codegen_flags: <defaults>
</compile_context>

<pallas_src>
import jax
import jax.numpy as jnp
from jax.experimental import pallas as pl
from jax.experimental.pallas import tpu as pltpu

_LANES = 128
_SMALL_FAST_PATH_BYTES = 1 << 20          # below this, kernel launch is pure overhead
_TARGET_BLOCK_BYTES = 4 * 1024 * 1024     # per-buffer VMEM block (~4 MiB)
_VMEM_LIMIT_BYTES = 48 * 1024 * 1024      # safe on v5e/v6e (128 MiB) and v7x (64 MiB)
_COL_CANDIDATES = (4096, 2048, 1024, 512, 256, 128)


def _touch_kernel(x_ref, o_ref):
    # Zero-traffic identity: the output buffer aliases the input buffer, so
    # there is nothing to move. `touch` only pins a read/write dependency on
    # the aliased output so the side-effecting call is not optimized away.
    del x_ref
    pltpu.touch(o_ref)


def _copy_kernel(x_ref, o_ref):
    # Pure pass-through tile copy: one vld + one vst per vreg, no VALU/MXU work.
    o_ref[...] = x_ref[...]


def _sublane_multiple(dtype):
    # 8 sublanes for 4-byte dtypes, 16 for 2-byte, 32 for 1-byte (packed).
    return max(8, 32 // jnp.dtype(dtype).itemsize)


def _identity_alias(x):
    """O(1) identity: aliased output, no data movement inside the kernel."""
    return pl.pallas_call(
        _touch_kernel,
        out_shape=jax.ShapeDtypeStruct(x.shape, x.dtype),
        in_specs=[pl.BlockSpec(memory_space=pl.ANY)],
        out_specs=pl.BlockSpec(memory_space=pl.ANY),
        input_output_aliases={0: 0},
        compiler_params=pltpu.CompilerParams(has_side_effects=True),
    )(x)


def _identity_copy(x):
    """Streaming identity copy: lane-dense (rows, K*128) tiles, ~4 MiB blocks."""
    if x.ndim == 0:
        return _identity_copy(x.reshape(1, 1)).reshape(())

    n = x.size
    itemsize = jnp.dtype(x.dtype).itemsize

    if n % _LANES != 0:
        # Odd sizes (rare): small -> single full-array block (no reshape/pad);
        # large -> minimal pad to a multiple of 128 lanes, copy, slice back.
        if x.nbytes <= _TARGET_BLOCK_BYTES:
            return pl.pallas_call(
                _copy_kernel,
                out_shape=jax.ShapeDtypeStruct(x.shape, x.dtype),
            )(x)
        flat = x.reshape(-1)
        pad = (-n) % _LANES
        padded = jnp.concatenate([flat, jnp.zeros((pad,), dtype=x.dtype)])
        return _identity_copy(padded)[:n].reshape(x.shape)

    # Lane-dense 2-D view: widest multiple-of-128 last dim that divides n.
    cols = _LANES
    for c in _COL_CANDIDATES:
        if n % c == 0:
            cols = c
            break
    rows = n // cols
    x2d = x.reshape(rows, cols)

    sub = _sublane_multiple(x.dtype)
    rows_per_block = max(1, _TARGET_BLOCK_BYTES // (cols * itemsize))
    if rows_per_block >= rows:
        block_rows = rows                          # one grid step, full dim
    else:
        block_rows = max(sub, (rows_per_block // sub) * sub)
    grid = (pl.cdiv(rows, block_rows),)            # edge block masked by Pallas

    out2d = pl.pallas_call(
        _copy_kernel,
        out_shape=jax.ShapeDtypeStruct((rows, cols), x.dtype),
        grid=grid,
        in_specs=[pl.BlockSpec((block_rows, cols), lambda i: (i, 0))],
        out_specs=pl.BlockSpec((block_rows, cols), lambda i: (i, 0)),
        compiler_params=pltpu.CompilerParams(
            dimension_semantics=("parallel",),     # shards grid across TCs on v7x
            vmem_limit_bytes=_VMEM_LIMIT_BYTES,
        ),
    )(x2d)
    return out2d.reshape(x.shape)


def identity_forward(x, *, mode="auto"):
    """Pallas equivalent of IdentityLayer.forward(x): same values/shape/dtype.

    mode:
      "auto"  - tiny tensors are returned as-is (launch cost dwarfs the copy);
                larger tensors take the zero-traffic aliased path.
      "alias" - aliased, no-op kernel (O(1) time / HBM traffic).
      "copy"  - streaming lane-dense copy kernel (fresh output buffer).
    """
    if mode == "auto":
        if x.nbytes < _SMALL_FAST_PATH_BYTES:
            return x
        mode = "alias"
    if mode == "alias":
        try:
            return _identity_alias(x)
        except Exception:
            # Defensive fallback: if the aliased no-op kernel is rejected by
            # the current backend/compiler version, use the streaming copy.
            return _identity_copy(x)
    if mode == "copy":
        return _identity_copy(x)
    raise ValueError(f"unknown mode: {mode}")


if __name__ == "__main__":
    # Identity accepts any tensor; use batch=2, channels=4, spatial=16x16.
    key = jax.random.PRNGKey(0)
    x = jax.random.normal(key, (2, 4, 16, 16), dtype=jnp.float32)

    # Exercise both kernel paths explicitly, plus the default dispatch.
    out_alias = jax.block_until_ready(identity_forward(x, mode="alias"))
    out_copy = jax.block_until_ready(identity_forward(x, mode="copy"))
    out_auto = jax.block_until_ready(identity_forward(x))

    for out in (out_alias, out_copy, out_auto):
        assert out.shape == x.shape and out.dtype == x.dtype
        assert jnp.array_equal(out, x), "identity mismatch"

    print("KERNEL_OK")
</pallas_src>

<mosaic_0001>
module attributes {stable_mosaic.version = 11 : i64} {
  func.func @_touch_kernel(%arg0: memref<2x4x16x16xf32, #tpu.memory_space<any>>, %arg1: memref<2x4x16x16xf32, #tpu.memory_space<any>>) attributes {dimension_semantics = [], scalar_prefetch = 0 : i64, scratch_operands = 0 : i64, tpu.core_type = #tpu.core_type<tc>} {
    return
  }
}

module attributes {stable_mosaic.version = 11 : i64} {
  func.func @_copy_kernel(%arg0: i32, %arg1: memref<1x2048xf32, #tpu.memory_space<vmem>>, %arg2: memref<1x2048xf32, #tpu.memory_space<vmem>>) attributes {dimension_semantics = [#tpu.dimension_semantics<parallel>], iteration_bounds = array<i64: 1>, scalar_prefetch = 0 : i64, scratch_operands = 0 : i64, tpu.core_type = #tpu.core_type<tc>, window_params = [{transform_indices = @transform_0, window_bounds = array<i64: 1, 2048>}, {transform_indices = @transform_1, window_bounds = array<i64: 1, 2048>}]} {
    %c0 = arith.constant 0 : index
    %c0_0 = arith.constant 0 : index
    %0 = vector.load %arg1[%c0, %c0_0] : memref<1x2048xf32, #tpu.memory_space<vmem>>, vector<1x2048xf32>
    %c0_1 = arith.constant 0 : index
    %c0_2 = arith.constant 0 : index
    %1 = vector.load %arg2[%c0_1, %c0_2] : memref<1x2048xf32, #tpu.memory_space<vmem>>, vector<1x2048xf32>
    tpu.vector_store %arg2[%c0_1, %c0_2], %0 {strides = array<i32>} : memref<1x2048xf32, #tpu.memory_space<vmem>>, vector<1x2048xf32>,
    return
  }
  func.func @transform_0(%arg0: i32) -> (i32, i32) {
    %c0_i32 = arith.constant 0 : i32
    %c0_i32_0 = arith.constant 0 : i32
    return %arg0, %c0_i32 : i32, i32
  }
  func.func @transform_1(%arg0: i32) -> (i32, i32) {
    %c0_i32 = arith.constant 0 : i32
    %c0_i32_0 = arith.constant 0 : i32
    return %arg0, %c0_i32 : i32, i32
  }
}

</mosaic_0001>

<bundles_post_ra>
// kernel: tpu_custom_call.1
= control target key start
LH: loop header
LB: loop body
LE: loop exit
PB: predicated region body
PF: predicated region fallthrough
CT: control target
= control target key end

     0   :  { %s16_s0 = inlined_call_operand.hbm [shape: f32[2,4,16,16], index: 0, kind: input, shape index: {}, may-alias: {0,1}]   ;;  %s17_s1 = inlined_call_operand.hbm [shape: f32[2,4,16,16], index: 1, kind: output, shape index: {}, may-alias: {0,1}]  }

// kernel: tpu_custom_call.1
= control target key start
LH: loop header
LB: loop body
LE: loop exit
PB: predicated region body
PF: predicated region fallthrough
CT: control target
= control target key end

     0   :  { %6 = vsyncpa [#allocation3], 0  ;;  %s126_s0 = inlined_call_operand.hbm [shape: f32[1,2048], index: 0, kind: input, shape index: {}]   ;;  %s127_s1 = inlined_call_operand.hbm [shape: f32[1,2048], index: 1, kind: output, shape index: {}]  }
   0x1   :  { %7 = vsyncpa [#allocation4], 0  ;;  %s90_s6 = smov [#allocation2]   ;;  %s42_s10 = scalar_lea.hbm %s126_s0, 256 }
   0x2   :  { %s14_s7 = sshll.u32 %s90_s6, 4  ;;  %p43_p0 = scmp.ne.s32.totalorder %s126_s0, %s42_s10  ;;  %s15_s7 = int_to_ptr.vmem [resolvable:$true] %s14_s7 }
   0x3   :  { %p46_p1 = scmp.lt.u32.totalorder %s42_s10, %s126_s0 }
   0x5   :  { %p48_p2 = pnand %p46_p1, %p43_p0 }
   0x7   :  { %51 = shalt.err (!%p48_p2)
}
   0x8   :  { %s52_s15 = scalar_lea.vmem %s15_s7, 256  ;;  %p57_p4 = scmp.lt.s32.totalorder %s15_s7, %s15_s7 }
   0x9   :  { %p53_p3 = scmp.ne.s32.totalorder %s15_s7, %s52_s15  ;;  %p58_p5 = scmp.lt.s32.totalorder %s52_s15, %s52_s15 }
   0xb   :  { %p59_p6 = por %p58_p5, %p57_p4 }
   0xd   :  { %p60_p7 = pnand %p59_p6, %p53_p3 }
   0xf   :  { %63 = shalt.err (!%p60_p7)
}
  0x10   :  { %17 = dma.hbm_to_vmem [thread:$0]  %s126_s0, 256, %s15_s7, [#allocation3]  }
  0x11   :  { %86 = dma.done.wait [#allocation3], 256  }
  0x12   :  { %87 = vsyncadd [#allocation3], 4294967040  ;;  %s91_s18 = smov [#allocation5]   ;;  %v21_v0 = vld [vmem:[#allocation2] sm:$0xff]  ;;  %v22_v1 = vld [vmem:[#allocation2 + $0x8] sm:$0xff] }
  0x13   :  { %s31_s19 = sshll.u32 %s91_s18, 4  ;;  %23 = vst [vmem:[#allocation5] sm:$0xff] %v21_v0  ;;  %24 = vst [vmem:[#allocation5 + $0x8] sm:$0xff] %v22_v1  ;;  %s32_s19 = int_to_ptr.vmem [resolvable:$true] %s31_s19 }
  0x14   :  { %s64_s20 = scalar_lea.vmem %s32_s19, 256  ;;  %p69_p9 = scmp.lt.s32.totalorder %s32_s19, %s32_s19 }
  0x15   :  { %p65_p8 = scmp.ne.s32.totalorder %s32_s19, %s64_s20  ;;  %p70_p10 = scmp.lt.s32.totalorder %s64_s20, %s64_s20 }
  0x17   :  { %p71_p11 = por %p70_p10, %p69_p9 }
  0x19   :  { %p72_p12 = pnand %p71_p11, %p65_p8 }
  0x1b   :  { %75 = shalt.err (!%p72_p12)
}
  0x1c   :  { %s76_s0 = scalar_lea.hbm %s127_s1, 256 }
  0x1d   :  { %p77_p13 = scmp.ne.s32.totalorder %s127_s1, %s76_s0  ;;  %p80_p0 = scmp.lt.u32.totalorder %s76_s0, %s127_s1 }
  0x1f   :  { %p82_p1 = pnand %p80_p0, %p77_p13 }
  0x21   :  { %85 = shalt.err (!%p82_p1)
}
  0x22   :  { %34 = dma.vmem_to_hbm [thread:$0]  %s32_s19, 256, %s127_s1, [#allocation4]  }
  0x23   :  { %88 = dma.done.wait [#allocation4], 256  }
  0x24   :  { %89 = vsyncadd [#allocation4], 4294967040 }
  0x25   :  { %38 = vsyncpa [#allocation3], 1 }
  0x26   :  { %39 = vsyncpa [#allocation4], 1 }

</bundles_post_ra>
